<compile_context>
chip_gen: v7x
topology: tpu7x:2x2x1
jax: 0.10.0
libtpu: 0.0.40
codegen_flags: <defaults>
</compile_context>

<pallas_src>
import functools

import jax
import jax.numpy as jnp
import numpy as np
from jax.experimental import pallas as pl
from jax.experimental.pallas import tpu as pltpu


def _binrot_kernel(pred_ref, side_ref, loss_ref, acc_ref, *, n_valid, block_n):
    """pred_ref: (8, BN) f32 VMEM  gathered head outputs, channel on sublanes
       side_ref: (8, BN) f32 VMEM  [mask, tb0, tb1, sin r0, cos r0, sin r1, cos r1, 0]
       loss_ref: (1, 1)  f32 SMEM  scalar loss (written on the last grid step)
       acc_ref : (6,)    f32 SMEM  running [ce1, ce2, s1, c1, s2, c2]
    """
    j = pl.program_id(0)

    @pl.when(j == 0)
    def _init():
        for t in range(6):
            acc_ref[t] = jnp.float32(0.0)

    pred = pred_ref[...]            # (8, BN)
    side = side_ref[...]            # (8, BN)

    # validity mask for this lane block (pad columns beyond N are dropped)
    col = jax.lax.broadcasted_iota(jnp.int32, (1, block_n), 1) + j * block_n
    rv = (col < n_valid).astype(jnp.float32)            # (1, BN)

    m = side[0:1, :]
    tb0, tb1 = side[1:2, :], side[2:3, :]
    sin0, cos0 = side[3:4, :], side[4:5, :]
    sin1, cos1 = side[5:6, :], side[6:7, :]

    # ---- masked 2-class cross entropy (summed; divided by N at finalize) ----
    def ce_sum(l0, l1, tgt):
        mx = jnp.maximum(l0, l1)
        lse = mx + jnp.log(jnp.exp(l0 - mx) + jnp.exp(l1 - mx))
        chosen = jnp.where(tgt == 1.0, l1, l0)
        return jnp.sum((lse - chosen) * rv)

    ce1 = ce_sum(pred[0:1, :] * m, pred[1:2, :] * m, tb0)
    ce2 = ce_sum(pred[4:5, :] * m, pred[5:6, :] * m, tb1)

    # ---- smooth-L1 residual terms over rows with nonzero bin target ---------
    def smooth_l1(d):
        a = jnp.abs(d)
        return jnp.where(a < 1.0, 0.5 * d * d, a - 0.5)

    v1 = jnp.where(tb0 != 0.0, rv, 0.0)
    v2 = jnp.where(tb1 != 0.0, rv, 0.0)
    s1 = jnp.sum((smooth_l1(pred[2:3, :] - sin0)
                  + smooth_l1(pred[3:4, :] - cos0)) * v1)
    s2 = jnp.sum((smooth_l1(pred[6:7, :] - sin1)
                  + smooth_l1(pred[7:8, :] - cos1)) * v2)

    acc_ref[0] += ce1
    acc_ref[1] += ce2
    acc_ref[2] += s1
    acc_ref[3] += jnp.sum(v1)
    acc_ref[4] += s2
    acc_ref[5] += jnp.sum(v2)

    @pl.when(j == pl.num_programs(0) - 1)
    def _finalize():
        inv_n = jnp.float32(1.0 / max(n_valid, 1))   # static; safe if N == 0
        loss_bin = (acc_ref[0] + acc_ref[1]) * inv_n
        c1, c2 = acc_ref[3], acc_ref[5]
        res1 = jnp.where(c1 > 0.0, acc_ref[2] / jnp.maximum(c1, 1.0), 0.0)
        res2 = jnp.where(c2 > 0.0, acc_ref[4] / jnp.maximum(c2, 1.0), 0.0)
        loss_ref[0, 0] = loss_bin + res1 + res2


@jax.jit
def bin_rot_loss(output, mask, ind, rotbin, rotres):
    """output: (B, 8, H, W) f32, mask: (B, K), ind: (B, K) i32,
    rotbin: (B, K, 2) i32, rotres: (B, K, 2) f32  ->  scalar f32 loss."""
    b, c, h, w = output.shape
    assert c == 8, "rot head must have 8 channels"
    k = ind.shape[1]
    n = b * k
    hw = h * w

    # Gather-first from the NATIVE NCHW layout: only the N needed spatial
    # positions are read; no full-map transpose / contiguous copy.
    feat = output.reshape(b, c, hw)
    idx = jnp.clip(ind.astype(jnp.int32), 0, hw - 1)       # guard bad indices
    idx = jnp.broadcast_to(idx[:, None, :], (b, c, k))
    gathered = jnp.take_along_axis(feat, idx, axis=2)      # (B, 8, K)
    # lane-dense table: pred[ch, b*K + k] == torch pred.view(-1, 8)[n, ch]
    pred = jnp.transpose(gathered, (1, 0, 2)).reshape(c, n)

    # packed side table, same lane-dense layout
    m = mask.reshape(n).astype(jnp.float32)
    tb = rotbin.reshape(n, 2).astype(jnp.float32)
    tr = rotres.reshape(n, 2).astype(jnp.float32)
    side = jnp.stack([m, tb[:, 0], tb[:, 1],
                      jnp.sin(tr[:, 0]), jnp.cos(tr[:, 0]),
                      jnp.sin(tr[:, 1]), jnp.cos(tr[:, 1]),
                      jnp.zeros_like(m)], axis=0)          # (8, N)

    block_n = 512
    n_pad = max(block_n, ((n + block_n - 1) // block_n) * block_n)
    pred = jnp.pad(pred, ((0, 0), (0, n_pad - n)))
    side = jnp.pad(side, ((0, 0), (0, n_pad - n)))

    loss = pl.pallas_call(
        functools.partial(_binrot_kernel, n_valid=n, block_n=block_n),
        out_shape=jax.ShapeDtypeStruct((1, 1), jnp.float32),
        grid=(n_pad // block_n,),
        in_specs=[pl.BlockSpec((c, block_n), lambda j: (0, j)),
                  pl.BlockSpec((c, block_n), lambda j: (0, j))],
        out_specs=pl.BlockSpec(memory_space=pltpu.MemorySpace.SMEM),
        scratch_shapes=[pltpu.SMEM((6,), jnp.float32)],
        compiler_params=pltpu.CompilerParams(
            dimension_semantics=("arbitrary",)),   # SMEM accumulator across blocks
    )(pred, side)
    return loss[0, 0]
    # TODO(synk): for feature maps too large to gather cheaply with XLA, swap
    # the wrapper gather for an in-kernel windowed HBM row-DMA gather.


def _reference_loss(output, mask, ind, rotbin, rotres):
    """Pure-JAX mirror of the PyTorch code, for verification."""
    b, c, h, w = output.shape
    k = ind.shape[1]
    feat = jnp.transpose(output, (0, 2, 3, 1)).reshape(b, h * w, c)
    idx = jnp.broadcast_to(ind[:, :, None].astype(jnp.int32), (b, k, c))
    pred = jnp.take_along_axis(feat, idx, axis=1)

    o = pred.reshape(-1, 8)
    tb = rotbin.reshape(-1, 2)
    tr = rotres.reshape(-1, 2)
    m = mask.reshape(-1, 1).astype(jnp.float32)

    def ce(logits, target):
        l = logits * m
        lse = jax.scipy.special.logsumexp(l, axis=1)
        chosen = jnp.take_along_axis(l, target[:, None].astype(jnp.int32), axis=1)[:, 0]
        return jnp.mean(lse - chosen)

    def sl1(x, y):
        d = x - y
        a = jnp.abs(d)
        return jnp.where(a < 1.0, 0.5 * d * d, a - 0.5)

    loss_bin1 = ce(o[:, 0:2], tb[:, 0])
    loss_bin2 = ce(o[:, 4:6], tb[:, 1])

    v1 = (tb[:, 0] != 0).astype(jnp.float32)
    v2 = (tb[:, 1] != 0).astype(jnp.float32)
    c1, c2 = jnp.sum(v1), jnp.sum(v2)
    r1 = jnp.where(
        c1 > 0,
        (jnp.sum(sl1(o[:, 2], jnp.sin(tr[:, 0])) * v1)
         + jnp.sum(sl1(o[:, 3], jnp.cos(tr[:, 0])) * v1)) / jnp.maximum(c1, 1.0),
        0.0)
    r2 = jnp.where(
        c2 > 0,
        (jnp.sum(sl1(o[:, 6], jnp.sin(tr[:, 1])) * v2)
         + jnp.sum(sl1(o[:, 7], jnp.cos(tr[:, 1])) * v2)) / jnp.maximum(c2, 1.0),
        0.0)
    return loss_bin1 + loss_bin2 + r1 + r2


if __name__ == "__main__":
    key = jax.random.PRNGKey(0)
    k1, k2, k3, k4, k5 = jax.random.split(key, 5)

    B, C, H, W, K = 2, 8, 16, 16, 8   # C=8 required by the rot-loss view(-1, 8)

    output = jax.random.normal(k1, (B, C, H, W), dtype=jnp.float32)
    ind = jax.random.randint(k2, (B, K), 0, H * W, dtype=jnp.int32)
    mask = jax.random.bernoulli(k3, 0.7, (B, K)).astype(jnp.float32)
    rotbin = jax.random.randint(k4, (B, K, 2), 0, 2, dtype=jnp.int32)
    rotres = jax.random.uniform(k5, (B, K, 2), dtype=jnp.float32,
                                minval=-np.pi, maxval=np.pi)

    loss = bin_rot_loss(output, mask, ind, rotbin, rotres)
    jax.block_until_ready(loss)

    ref = _reference_loss(output, mask, ind, rotbin, rotres)
    jax.block_until_ready(ref)

    assert np.allclose(np.asarray(loss), np.asarray(ref), rtol=1e-3, atol=1e-3), (
        f"mismatch: kernel={float(loss)} ref={float(ref)}")

    print("KERNEL_OK")
</pallas_src>

<mosaic_0001>
module attributes {stable_mosaic.version = 11 : i64} {
  func.func @_binrot_kernel(%arg0: i32, %arg1: memref<8x512xf32, #tpu.memory_space<vmem>>, %arg2: memref<8x512xf32, #tpu.memory_space<vmem>>, %arg3: memref<1x1xf32, #tpu.memory_space<smem>>, %arg4: memref<6xf32, #tpu.memory_space<smem>>) attributes {dimension_semantics = [#tpu.dimension_semantics<arbitrary>], iteration_bounds = array<i64: 1>, scalar_prefetch = 0 : i64, scratch_operands = 1 : i64, tpu.core_type = #tpu.core_type<tc>, window_params = [{transform_indices = @transform_0, window_bounds = array<i64: 8, 512>}, {transform_indices = @transform_1, window_bounds = array<i64: 8, 512>}, {transform_indices = @transform_2, window_bounds = array<i64: 1, 1>}]} {
    %c0_i32 = arith.constant 0 : i32
    %0 = arith.cmpi eq, %arg0, %c0_i32 : i32
    %1 = arith.extui %0 : i1 to i32
    %c0_i32_0 = arith.constant 0 : i32
    %2 = arith.cmpi ne, %1, %c0_i32_0 : i32
    scf.if %2 {
      %cst_36 = arith.constant 0.000000e+00 : f32
      %c0_37 = arith.constant 0 : index
      %155 = memref.load %arg4[%c0_37] : memref<6xf32, #tpu.memory_space<smem>>
      memref.store %cst_36, %arg4[%c0_37] : memref<6xf32, #tpu.memory_space<smem>>
      %cst_38 = arith.constant 0.000000e+00 : f32
      %c1_39 = arith.constant 1 : index
      %156 = memref.load %arg4[%c1_39] : memref<6xf32, #tpu.memory_space<smem>>
      memref.store %cst_38, %arg4[%c1_39] : memref<6xf32, #tpu.memory_space<smem>>
      %cst_40 = arith.constant 0.000000e+00 : f32
      %c2_41 = arith.constant 2 : index
      %157 = memref.load %arg4[%c2_41] : memref<6xf32, #tpu.memory_space<smem>>
      memref.store %cst_40, %arg4[%c2_41] : memref<6xf32, #tpu.memory_space<smem>>
      %cst_42 = arith.constant 0.000000e+00 : f32
      %c3_43 = arith.constant 3 : index
      %158 = memref.load %arg4[%c3_43] : memref<6xf32, #tpu.memory_space<smem>>
      memref.store %cst_42, %arg4[%c3_43] : memref<6xf32, #tpu.memory_space<smem>>
      %cst_44 = arith.constant 0.000000e+00 : f32
      %c4_45 = arith.constant 4 : index
      %159 = memref.load %arg4[%c4_45] : memref<6xf32, #tpu.memory_space<smem>>
      memref.store %cst_44, %arg4[%c4_45] : memref<6xf32, #tpu.memory_space<smem>>
      %cst_46 = arith.constant 0.000000e+00 : f32
      %c5_47 = arith.constant 5 : index
      %160 = memref.load %arg4[%c5_47] : memref<6xf32, #tpu.memory_space<smem>>
      memref.store %cst_46, %arg4[%c5_47] : memref<6xf32, #tpu.memory_space<smem>>
    } else {
    }
    %c0 = arith.constant 0 : index
    %c0_1 = arith.constant 0 : index
    %3 = vector.load %arg1[%c0, %c0_1] : memref<8x512xf32, #tpu.memory_space<vmem>>, vector<8x512xf32>
    %c0_2 = arith.constant 0 : index
    %c0_3 = arith.constant 0 : index
    %4 = vector.load %arg2[%c0_2, %c0_3] : memref<8x512xf32, #tpu.memory_space<vmem>>, vector<8x512xf32>
    %5 = tpu.iota {dimensions = array<i32: 1>} : vector<1x512xi32>
    %c512_i32 = arith.constant 512 : i32
    %6 = arith.muli %arg0, %c512_i32 : i32
    %7 = vector.broadcast %6 : i32 to vector<1x512xi32>
    %8 = arith.addi %5, %7 : vector<1x512xi32>
    %c16_i32 = arith.constant 16 : i32
    %9 = vector.broadcast %c16_i32 : i32 to vector<1x512xi32>
    %10 = arith.cmpi slt, %8, %9 : vector<1x512xi32>
    %11 = arith.extui %10 : vector<1x512xi1> to vector<1x512xi32>
    %12 = arith.sitofp %11 : vector<1x512xi32> to vector<1x512xf32>
    %13 = vector.extract_strided_slice %4 {offsets = [0, 0], sizes = [1, 512], strides = [1, 1]} : vector<8x512xf32> to vector<1x512xf32>
    %14 = vector.extract_strided_slice %4 {offsets = [1, 0], sizes = [1, 512], strides = [1, 1]} : vector<8x512xf32> to vector<1x512xf32>
    %15 = vector.extract_strided_slice %4 {offsets = [2, 0], sizes = [1, 512], strides = [1, 1]} : vector<8x512xf32> to vector<1x512xf32>
    %16 = vector.extract_strided_slice %4 {offsets = [3, 0], sizes = [1, 512], strides = [1, 1]} : vector<8x512xf32> to vector<1x512xf32>
    %17 = vector.extract_strided_slice %4 {offsets = [4, 0], sizes = [1, 512], strides = [1, 1]} : vector<8x512xf32> to vector<1x512xf32>
    %18 = vector.extract_strided_slice %4 {offsets = [5, 0], sizes = [1, 512], strides = [1, 1]} : vector<8x512xf32> to vector<1x512xf32>
    %19 = vector.extract_strided_slice %4 {offsets = [6, 0], sizes = [1, 512], strides = [1, 1]} : vector<8x512xf32> to vector<1x512xf32>
    %20 = vector.extract_strided_slice %3 {offsets = [0, 0], sizes = [1, 512], strides = [1, 1]} : vector<8x512xf32> to vector<1x512xf32>
    %21 = arith.mulf %20, %13 : vector<1x512xf32>
    %22 = vector.extract_strided_slice %3 {offsets = [1, 0], sizes = [1, 512], strides = [1, 1]} : vector<8x512xf32> to vector<1x512xf32>
    %23 = arith.mulf %22, %13 : vector<1x512xf32>
    %24 = arith.maximumf %21, %23 : vector<1x512xf32>
    %25 = arith.subf %21, %24 : vector<1x512xf32>
    %26 = math.exp %25 : vector<1x512xf32>
    %27 = arith.subf %23, %24 : vector<1x512xf32>
    %28 = math.exp %27 : vector<1x512xf32>
    %29 = arith.addf %26, %28 : vector<1x512xf32>
    %30 = math.log %29 : vector<1x512xf32>
    %31 = arith.addf %24, %30 : vector<1x512xf32>
    %cst = arith.constant 1.000000e+00 : f32
    %32 = vector.broadcast %cst : f32 to vector<1x512xf32>
    %33 = arith.cmpf oeq, %14, %32 : vector<1x512xf32>
    %34 = arith.select %33, %23, %21 : vector<1x512xi1>, vector<1x512xf32>
    %35 = arith.subf %31, %34 : vector<1x512xf32>
    %36 = arith.mulf %35, %12 : vector<1x512xf32>
    %37 = vector.shape_cast %36 : vector<1x512xf32> to vector<1x1x512xf32>
    %cst_4 = arith.constant dense<0.000000e+00> : vector<1xf32>
    %38 = vector.multi_reduction <add>, %37, %cst_4 [1, 2] : vector<1x1x512xf32> to vector<1xf32>
    %39 = vector.shape_cast %38 : vector<1xf32> to vector<1x1x1xf32>
    %40 = vector.extract %39[0, 0, 0] : f32 from vector<1x1x1xf32>
    %41 = vector.extract_strided_slice %3 {offsets = [4, 0], sizes = [1, 512], strides = [1, 1]} : vector<8x512xf32> to vector<1x512xf32>
    %42 = arith.mulf %41, %13 : vector<1x512xf32>
    %43 = vector.extract_strided_slice %3 {offsets = [5, 0], sizes = [1, 512], strides = [1, 1]} : vector<8x512xf32> to vector<1x512xf32>
    %44 = arith.mulf %43, %13 : vector<1x512xf32>
    %45 = arith.maximumf %42, %44 : vector<1x512xf32>
    %46 = arith.subf %42, %45 : vector<1x512xf32>
    %47 = math.exp %46 : vector<1x512xf32>
    %48 = arith.subf %44, %45 : vector<1x512xf32>
    %49 = math.exp %48 : vector<1x512xf32>
    %50 = arith.addf %47, %49 : vector<1x512xf32>
    %51 = math.log %50 : vector<1x512xf32>
    %52 = arith.addf %45, %51 : vector<1x512xf32>
    %cst_5 = arith.constant 1.000000e+00 : f32
    %53 = vector.broadcast %cst_5 : f32 to vector<1x512xf32>
    %54 = arith.cmpf oeq, %15, %53 : vector<1x512xf32>
    %55 = arith.select %54, %44, %42 : vector<1x512xi1>, vector<1x512xf32>
    %56 = arith.subf %52, %55 : vector<1x512xf32>
    %57 = arith.mulf %56, %12 : vector<1x512xf32>
    %58 = vector.shape_cast %57 : vector<1x512xf32> to vector<1x1x512xf32>
    %cst_6 = arith.constant dense<0.000000e+00> : vector<1xf32>
    %59 = vector.multi_reduction <add>, %58, %cst_6 [1, 2] : vector<1x1x512xf32> to vector<1xf32>
    %60 = vector.shape_cast %59 : vector<1xf32> to vector<1x1x1xf32>
    %61 = vector.extract %60[0, 0, 0] : f32 from vector<1x1x1xf32>
    %cst_7 = arith.constant 0.000000e+00 : f32
    %62 = vector.broadcast %cst_7 : f32 to vector<1x512xf32>
    %63 = arith.cmpf one, %14, %62 : vector<1x512xf32>
    %cst_8 = arith.constant 0.000000e+00 : f32
    %64 = vector.broadcast %cst_8 : f32 to vector<1x512xf32>
    %65 = arith.select %63, %12, %64 : vector<1x512xi1>, vector<1x512xf32>
    %cst_9 = arith.constant 0.000000e+00 : f32
    %66 = vector.broadcast %cst_9 : f32 to vector<1x512xf32>
    %67 = arith.cmpf one, %15, %66 : vector<1x512xf32>
    %cst_10 = arith.constant 0.000000e+00 : f32
    %68 = vector.broadcast %cst_10 : f32 to vector<1x512xf32>
    %69 = arith.select %67, %12, %68 : vector<1x512xi1>, vector<1x512xf32>
    %70 = vector.extract_strided_slice %3 {offsets = [2, 0], sizes = [1, 512], strides = [1, 1]} : vector<8x512xf32> to vector<1x512xf32>
    %71 = arith.subf %70, %16 : vector<1x512xf32>
    %72 = math.absf %71 : vector<1x512xf32>
    %cst_11 = arith.constant 1.000000e+00 : f32
    %73 = vector.broadcast %cst_11 : f32 to vector<1x512xf32>
    %74 = arith.cmpf olt, %72, %73 : vector<1x512xf32>
    %cst_12 = arith.constant 5.000000e-01 : f32
    %75 = vector.broadcast %cst_12 : f32 to vector<1x512xf32>
    %76 = arith.mulf %75, %71 : vector<1x512xf32>
    %77 = arith.mulf %76, %71 : vector<1x512xf32>
    %cst_13 = arith.constant 5.000000e-01 : f32
    %78 = vector.broadcast %cst_13 : f32 to vector<1x512xf32>
    %79 = arith.subf %72, %78 : vector<1x512xf32>
    %80 = arith.select %74, %77, %79 : vector<1x512xi1>, vector<1x512xf32>
    %81 = vector.extract_strided_slice %3 {offsets = [3, 0], sizes = [1, 512], strides = [1, 1]} : vector<8x512xf32> to vector<1x512xf32>
    %82 = arith.subf %81, %17 : vector<1x512xf32>
    %83 = math.absf %82 : vector<1x512xf32>
    %cst_14 = arith.constant 1.000000e+00 : f32
    %84 = vector.broadcast %cst_14 : f32 to vector<1x512xf32>
    %85 = arith.cmpf olt, %83, %84 : vector<1x512xf32>
    %cst_15 = arith.constant 5.000000e-01 : f32
    %86 = vector.broadcast %cst_15 : f32 to vector<1x512xf32>
    %87 = arith.mulf %86, %82 : vector<1x512xf32>
    %88 = arith.mulf %87, %82 : vector<1x512xf32>
    %cst_16 = arith.constant 5.000000e-01 : f32
    %89 = vector.broadcast %cst_16 : f32 to vector<1x512xf32>
    %90 = arith.subf %83, %89 : vector<1x512xf32>
    %91 = arith.select %85, %88, %90 : vector<1x512xi1>, vector<1x512xf32>
    %92 = arith.addf %80, %91 : vector<1x512xf32>
    %93 = arith.mulf %92, %65 : vector<1x512xf32>
    %94 = vector.shape_cast %93 : vector<1x512xf32> to vector<1x1x512xf32>
    %cst_17 = arith.constant dense<0.000000e+00> : vector<1xf32>
    %95 = vector.multi_reduction <add>, %94, %cst_17 [1, 2] : vector<1x1x512xf32> to vector<1xf32>
    %96 = vector.shape_cast %95 : vector<1xf32> to vector<1x1x1xf32>
    %97 = vector.extract %96[0, 0, 0] : f32 from vector<1x1x1xf32>
    %98 = vector.extract_strided_slice %3 {offsets = [6, 0], sizes = [1, 512], strides = [1, 1]} : vector<8x512xf32> to vector<1x512xf32>
    %99 = arith.subf %98, %18 : vector<1x512xf32>
    %100 = math.absf %99 : vector<1x512xf32>
    %cst_18 = arith.constant 1.000000e+00 : f32
    %101 = vector.broadcast %cst_18 : f32 to vector<1x512xf32>
    %102 = arith.cmpf olt, %100, %101 : vector<1x512xf32>
    %cst_19 = arith.constant 5.000000e-01 : f32
    %103 = vector.broadcast %cst_19 : f32 to vector<1x512xf32>
    %104 = arith.mulf %103, %99 : vector<1x512xf32>
    %105 = arith.mulf %104, %99 : vector<1x512xf32>
    %cst_20 = arith.constant 5.000000e-01 : f32
    %106 = vector.broadcast %cst_20 : f32 to vector<1x512xf32>
    %107 = arith.subf %100, %106 : vector<1x512xf32>
    %108 = arith.select %102, %105, %107 : vector<1x512xi1>, vector<1x512xf32>
    %109 = vector.extract_strided_slice %3 {offsets = [7, 0], sizes = [1, 512], strides = [1, 1]} : vector<8x512xf32> to vector<1x512xf32>
    %110 = arith.subf %109, %19 : vector<1x512xf32>
    %111 = math.absf %110 : vector<1x512xf32>
    %cst_21 = arith.constant 1.000000e+00 : f32
    %112 = vector.broadcast %cst_21 : f32 to vector<1x512xf32>
    %113 = arith.cmpf olt, %111, %112 : vector<1x512xf32>
    %cst_22 = arith.constant 5.000000e-01 : f32
    %114 = vector.broadcast %cst_22 : f32 to vector<1x512xf32>
    %115 = arith.mulf %114, %110 : vector<1x512xf32>
    %116 = arith.mulf %115, %110 : vector<1x512xf32>
    %cst_23 = arith.constant 5.000000e-01 : f32
    %117 = vector.broadcast %cst_23 : f32 to vector<1x512xf32>
    %118 = arith.subf %111, %117 : vector<1x512xf32>
    %119 = arith.select %113, %116, %118 : vector<1x512xi1>, vector<1x512xf32>
    %120 = arith.addf %108, %119 : vector<1x512xf32>
    %121 = arith.mulf %120, %69 : vector<1x512xf32>
    %122 = vector.shape_cast %121 : vector<1x512xf32> to vector<1x1x512xf32>
    %cst_24 = arith.constant dense<0.000000e+00> : vector<1xf32>
    %123 = vector.multi_reduction <add>, %122, %cst_24 [1, 2] : vector<1x1x512xf32> to vector<1xf32>
    %124 = vector.shape_cast %123 : vector<1xf32> to vector<1x1x1xf32>
    %125 = vector.extract %124[0, 0, 0] : f32 from vector<1x1x1xf32>
    %c0_25 = arith.constant 0 : index
    %126 = memref.load %arg4[%c0_25] : memref<6xf32, #tpu.memory_space<smem>>
    %127 = arith.addf %126, %40 : f32
    %c0_26 = arith.constant 0 : index
    %128 = memref.load %arg4[%c0_26] : memref<6xf32, #tpu.memory_space<smem>>
    memref.store %127, %arg4[%c0_26] : memref<6xf32, #tpu.memory_space<smem>>
    %c1 = arith.constant 1 : index
    %129 = memref.load %arg4[%c1] : memref<6xf32, #tpu.memory_space<smem>>
    %130 = arith.addf %129, %61 : f32
    %c1_27 = arith.constant 1 : index
    %131 = memref.load %arg4[%c1_27] : memref<6xf32, #tpu.memory_space<smem>>
    memref.store %130, %arg4[%c1_27] : memref<6xf32, #tpu.memory_space<smem>>
    %c2 = arith.constant 2 : index
    %132 = memref.load %arg4[%c2] : memref<6xf32, #tpu.memory_space<smem>>
    %133 = arith.addf %132, %97 : f32
    %c2_28 = arith.constant 2 : index
    %134 = memref.load %arg4[%c2_28] : memref<6xf32, #tpu.memory_space<smem>>
    memref.store %133, %arg4[%c2_28] : memref<6xf32, #tpu.memory_space<smem>>
    %c3 = arith.constant 3 : index
    %135 = memref.load %arg4[%c3] : memref<6xf32, #tpu.memory_space<smem>>
    %136 = vector.shape_cast %65 : vector<1x512xf32> to vector<1x1x512xf32>
    %cst_29 = arith.constant dense<0.000000e+00> : vector<1xf32>
    %137 = vector.multi_reduction <add>, %136, %cst_29 [1, 2] : vector<1x1x512xf32> to vector<1xf32>
    %138 = vector.shape_cast %137 : vector<1xf32> to vector<1x1x1xf32>
    %139 = vector.extract %138[0, 0, 0] : f32 from vector<1x1x1xf32>
    %140 = arith.addf %135, %139 : f32
    %c3_30 = arith.constant 3 : index
    %141 = memref.load %arg4[%c3_30] : memref<6xf32, #tpu.memory_space<smem>>
    memref.store %140, %arg4[%c3_30] : memref<6xf32, #tpu.memory_space<smem>>
    %c4 = arith.constant 4 : index
    %142 = memref.load %arg4[%c4] : memref<6xf32, #tpu.memory_space<smem>>
    %143 = arith.addf %142, %125 : f32
    %c4_31 = arith.constant 4 : index
    %144 = memref.load %arg4[%c4_31] : memref<6xf32, #tpu.memory_space<smem>>
    memref.store %143, %arg4[%c4_31] : memref<6xf32, #tpu.memory_space<smem>>
    %c5 = arith.constant 5 : index
    %145 = memref.load %arg4[%c5] : memref<6xf32, #tpu.memory_space<smem>>
    %146 = vector.shape_cast %69 : vector<1x512xf32> to vector<1x1x512xf32>
    %cst_32 = arith.constant dense<0.000000e+00> : vector<1xf32>
    %147 = vector.multi_reduction <add>, %146, %cst_32 [1, 2] : vector<1x1x512xf32> to vector<1xf32>
    %148 = vector.shape_cast %147 : vector<1xf32> to vector<1x1x1xf32>
    %149 = vector.extract %148[0, 0, 0] : f32 from vector<1x1x1xf32>
    %150 = arith.addf %145, %149 : f32
    %c5_33 = arith.constant 5 : index
    %151 = memref.load %arg4[%c5_33] : memref<6xf32, #tpu.memory_space<smem>>
    memref.store %150, %arg4[%c5_33] : memref<6xf32, #tpu.memory_space<smem>>
    %c0_i32_34 = arith.constant 0 : i32
    %152 = arith.cmpi eq, %arg0, %c0_i32_34 : i32
    %153 = arith.extui %152 : i1 to i32
    %c0_i32_35 = arith.constant 0 : i32
    %154 = arith.cmpi ne, %153, %c0_i32_35 : i32
    scf.if %154 {
      %c0_36 = arith.constant 0 : index
      %155 = memref.load %arg4[%c0_36] : memref<6xf32, #tpu.memory_space<smem>>
      %c1_37 = arith.constant 1 : index
      %156 = memref.load %arg4[%c1_37] : memref<6xf32, #tpu.memory_space<smem>>
      %157 = arith.addf %155, %156 : f32
      %cst_38 = arith.constant 6.250000e-02 : f32
      %158 = arith.mulf %157, %cst_38 : f32
      %c3_39 = arith.constant 3 : index
      %159 = memref.load %arg4[%c3_39] : memref<6xf32, #tpu.memory_space<smem>>
      %c5_40 = arith.constant 5 : index
      %160 = memref.load %arg4[%c5_40] : memref<6xf32, #tpu.memory_space<smem>>
      %cst_41 = arith.constant 0.000000e+00 : f32
      %161 = arith.cmpf ogt, %159, %cst_41 : f32
      %c2_42 = arith.constant 2 : index
      %162 = memref.load %arg4[%c2_42] : memref<6xf32, #tpu.memory_space<smem>>
      %cst_43 = arith.constant 1.000000e+00 : f32
      %163 = arith.maximumf %159, %cst_43 : f32
      %164 = arith.divf %162, %163 : f32
      %cst_44 = arith.constant 0.000000e+00 : f32
      %165 = arith.select %161, %164, %cst_44 : f32
      %cst_45 = arith.constant 0.000000e+00 : f32
      %166 = arith.cmpf ogt, %160, %cst_45 : f32
      %c4_46 = arith.constant 4 : index
      %167 = memref.load %arg4[%c4_46] : memref<6xf32, #tpu.memory_space<smem>>
      %cst_47 = arith.constant 1.000000e+00 : f32
      %168 = arith.maximumf %160, %cst_47 : f32
      %169 = arith.divf %167, %168 : f32
      %cst_48 = arith.constant 0.000000e+00 : f32
      %170 = arith.select %166, %169, %cst_48 : f32
      %171 = arith.addf %158, %165 : f32
      %172 = arith.addf %171, %170 : f32
      %c0_49 = arith.constant 0 : index
      %c0_50 = arith.constant 0 : index
      %173 = memref.load %arg3[%c0_49, %c0_50] : memref<1x1xf32, #tpu.memory_space<smem>>
      memref.store %172, %arg3[%c0_49, %c0_50] : memref<1x1xf32, #tpu.memory_space<smem>>
    } else {
    }
    return
  }
  func.func @transform_0(%arg0: i32) -> (i32, i32) {
    %c0_i32 = arith.constant 0 : i32
    %c0_i32_0 = arith.constant 0 : i32
    return %c0_i32, %arg0 : i32, i32
  }
  func.func @transform_1(%arg0: i32) -> (i32, i32) {
    %c0_i32 = arith.constant 0 : i32
    %c0_i32_0 = arith.constant 0 : i32
    return %c0_i32, %arg0 : i32, i32
  }
  func.func @transform_2(%arg0: i32) -> (i32, i32) {
    %c0_i32 = arith.constant 0 : i32
    %c0_i32_0 = arith.constant 0 : i32
    %c0_i32_1 = arith.constant 0 : i32
    return %c0_i32, %c0_i32_0 : i32, i32
  }
}

</mosaic_0001>

<bundles_post_ra>
// kernel: bin_rot_loss.1
= control target key start
LH: loop header
LB: loop body
LE: loop exit
PB: predicated region body
PF: predicated region fallthrough
CT: control target
= control target key end

     0   :  { %v36_v0 = vlaneseq  ;;  %v796_v5 = vmov 0.0   ;;  %s1157_s0 = inlined_call_operand.vmem [shape: f32[8,512], index: 0, kind: input, shape index: {}]   ;;  %s1158_s1 = inlined_call_operand.vmem [shape: f32[8,512], index: 1, kind: input, shape index: {}]   ;;  %s1159_s2 = inlined_call_operand.hbm [shape: f32[1,1], index: 2, kind: output, shape index: {}]  }
   0x1   :  { %v817_v1 = vld [vmem:[%s1157_s0] sm:$0xff]  ;;  %v822_v2 = vld [vmem:[%s1157_s0 + $0x8] sm:$0xff]  ;;  %v835_v6 = vrot.slane %v796_v5, 7  ;;  %v838_v7 = vrot.slane %v796_v5, 4  ;;  %v843_v8 = vld [vmem:[%s1158_s1 + $0x10] sm:$0xff] }
   0x2   :  { %v827_v3 = vld [vmem:[%s1158_s1] sm:$0xff]  ;;  %v832_v4 = vld [vmem:[%s1158_s1 + $0x8] sm:$0xff]  ;;  %v848_v9 = vld [vmem:[%s1158_s1 + $0x18] sm:$0xff]  ;;  %v37_v10 = vand.u32 127, %v36_v0  ;;  %v402_v13 = vrot.slane %v843_v8, 1 }
   0x3   :  { %vm392_vm0 = vcmp.ne.f32.partialorder %v827_v3, 0.0  ;;  %v400_v11 = vrot.slane %v827_v3, 1  ;;  %v401_v12 = vrot.slane %v832_v4, 1  ;;  %v403_v14 = vrot.slane %v848_v9, 1 }
   0x4   :  { %v67_v15 = vrot.slane %v827_v3, 7  ;;  %v68_v16 = vrot.slane %v832_v4, 7 }
   0x5   :  { %7 = vsyncpa [#allocation4], 0  ;;  %v860_v17 = vld [vmem:[%s1157_s0 + $0x10] sm:$0xff]  ;;  %v865_v18 = vld [vmem:[%s1157_s0 + $0x18] sm:$0xff]  ;;  %vm47_vm1 = vcmp.lt.s32.totalorder %v37_v10, 16  ;;  %v408_v19 = vsub.f32 %v817_v1, %v400_v11  ;;  %v409_v20 = vsub.f32 %v822_v2, %v401_v12  ;;  %v69_v21 = vrot.slane %v843_v8, 7 }
   0x6   :  { %v871_v22 = vsel %vm47_vm1, 1.0, %v796_v5  ;;  %v410_v23 = vsub.f32 %v860_v17, %v402_v13  ;;  %v411_v24 = vsub.f32 %v865_v18, %v403_v14  ;;  %v70_v25 = vrot.slane %v848_v9, 7  ;;  %s797_s29 = smov 1.0   ;;  %s784_s14 = scalar_lea.hbm %s1159_s2, 16 }
   0x7   :  { %v879_v26 = vsel %vm392_vm0, %v871_v22, 0.0  ;;  %v412_v27 = vand.u32 2147483647, %v408_v19  ;;  %v413_v28 = vand.u32 2147483647, %v409_v20  ;;  %v420_v29 = vmul.f32 0.5, %v408_v19  ;;  %p785_p2 = scmp.ne.s32.totalorder %s1159_s2, %s784_s14  ;;  %p788_p3 = scmp.lt.u32.totalorder %s784_s14, %s1159_s2 }
   0x8   :  { %v414_v30 = vand.u32 2147483647, %v410_v23  ;;  %v415_v31 = vand.u32 2147483647, %v411_v24  ;;  %v421_v32 = vmul.f32 0.5, %v409_v20  ;;  %v422_v33 = vmul.f32 0.5, %v410_v23 }
   0x9   :  { %vm881_vm2 = vcmp.lt.f32.partialorder %v412_v27, 1.0  ;;  %vm885_vm3 = vcmp.lt.f32.partialorder %v413_v28, 1.0  ;;  %v423_v36 = vmul.f32 0.5, %v411_v24  ;;  %v424_v37 = vmul.f32 %v420_v29, %v408_v19  ;;  %p790_p4 = pnand %p788_p3, %p785_p2 }
   0xa   :  { %vm418_vm4 = vcmp.lt.f32.partialorder %v414_v30, 1.0  ;;  %vm889_vm5 = vcmp.lt.f32.partialorder %v415_v31, 1.0  ;;  %v425_v39 = vmul.f32 %v421_v32, %v409_v20  ;;  %v426_v40 = vmul.f32 %v422_v33, %v410_v23 }
   0xb   :  { %vm199_vm6 = vcmask 1040384   ;;  %v427_v41 = vmul.f32 %v423_v36, %v411_v24  ;;  %v695_v42 = vadd.f32 -0.5, %v412_v27  ;;  %v696_v43 = vadd.f32 -0.5, %v413_v28 }
   0xc   :  { %v697_v44 = vadd.f32 -0.5, %v414_v30  ;;  %v698_v45 = vadd.f32 -0.5, %v415_v31  ;;  %v456_v46 = vrot.slane %v879_v26, 7  ;;  %v496_v47 = vsub.f32 %v817_v1, %v67_v15 }
   0xd   :  { %v497_v48 = vsub.f32 %v822_v2, %v68_v16  ;;  %v432_v49 = vsel %vm881_vm2, %v424_v37, %v695_v42  ;;  %v433_v50 = vsel %vm885_vm3, %v425_v39, %v696_v43  ;;  %v498_v52 = vsub.f32 %v860_v17, %v69_v21 }
   0xe   :  { %v434_v51 = vsel %vm418_vm4, %v426_v40, %v697_v44  ;;  %v435_v53 = vsel %vm889_vm5, %v427_v41, %v698_v45  ;;  %v440_v54 = vrot.slane %v432_v49, 1  ;;  %v441_v55 = vrot.slane %v433_v50, 1 }
   0xf   :  { %v442_v56 = vrot.slane %v434_v51, 1  ;;  %v443_v57 = vrot.slane %v435_v53, 1  ;;  %v499_v58 = vsub.f32 %v865_v18, %v70_v25  ;;  %v500_v59 = vand.u32 2147483647, %v496_v47 }
  0x10   :  { %v501_v60 = vand.u32 2147483647, %v497_v48  ;;  %v448_v61 = vadd.f32 %v440_v54, %v432_v49  ;;  %v449_v62 = vadd.f32 %v441_v55, %v433_v50  ;;  %v502_v0 = vand.u32 2147483647, %v498_v52 }
  0x11   :  { %v450_v63 = vadd.f32 %v442_v56, %v434_v51  ;;  %v451_v10 = vadd.f32 %v443_v57, %v435_v53  ;;  %v503_v11 = vand.u32 2147483647, %v499_v58  ;;  %vm912_vm7 = vcmp.lt.f32.partialorder %v500_v59, 1.0 }
  0x12   :  { %vm916_vm8 = vcmp.lt.f32.partialorder %v501_v60, 1.0  ;;  %v464_v14 = vmul.f32 %v456_v46, %v448_v61  ;;  %v465_v19 = vmul.f32 %v835_v6, %v449_v62  ;;  %vm922_vm9 = vcmp.lt.f32.partialorder %v502_v0, 1.0 }
  0x13   :  { %v466_v20 = vmul.f32 %v835_v6, %v450_v63  ;;  %v467_v24 = vmul.f32 %v835_v6, %v451_v10  ;;  %vm927_vm10 = vcmp.lt.f32.partialorder %v503_v11, 1.0  ;;  %v508_v28 = vmul.f32 0.5, %v496_v47 }
  0x14   :  { %v509_v29 = vmul.f32 0.5, %v497_v48  ;;  %v472_v30 = vrot.slane %v464_v14, 2  ;;  %v473_v31 = vrot.slane %v465_v19, 2  ;;  %v510_v33 = vmul.f32 0.5, %v498_v52 }
  0x15   :  { %v474_v32 = vrot.slane %v466_v20, 2  ;;  %v475_v34 = vrot.slane %v467_v24, 2  ;;  %v511_v35 = vmul.f32 0.5, %v499_v58  ;;  %v512_v36 = vmul.f32 %v508_v28, %v496_v47 }
  0x16   :  { %v513_v37 = vmul.f32 %v509_v29, %v497_v48  ;;  %v480_v38 = vsel %vm199_vm6, %v472_v30, 0.0  ;;  %v481_v39 = vsel %vm199_vm6, %v473_v31, 0.0  ;;  %v514_v40 = vmul.f32 %v510_v33, %v498_v52 }
  0x17   :  { %v483_v6 = vsel %vm199_vm6, %v474_v32, 0.0  ;;  %v482_v41 = vadd.f32 %v481_v39, %v480_v38  ;;  %v485_v42 = vsel %vm199_vm6, %v475_v34, 0.0  ;;  %v515_v43 = vmul.f32 %v511_v35, %v499_v58 }
  0x18   :  { %v699_v44 = vadd.f32 -0.5, %v500_v59  ;;  %v700_v45 = vadd.f32 -0.5, %v501_v60  ;;  %v701_v46 = vadd.f32 -0.5, %v502_v0  ;;  %v702_v49 = vadd.f32 -0.5, %v503_v11 }
  0x19   :  { %v540_v50 = vrot.slane %v879_v26, 4  ;;  %v484_v51 = vadd.f32 %v483_v6, %v482_v41  ;;  %v940_v48 = vmul.f32 %v827_v3, %v817_v1  ;;  %v944_v52 = vmul.f32 %v832_v4, %v822_v2 }
  0x1a   :  { %v520_v47 = vsel %vm912_vm7, %v512_v36, %v699_v44  ;;  %v521_v53 = vsel %vm916_vm8, %v513_v37, %v700_v45  ;;  %v522_v54 = vsel %vm922_vm9, %v514_v40, %v701_v46  ;;  %v523_v55 = vsel %vm927_vm10, %v515_v43, %v702_v49 }
  0x1b   :  { %v528_v56 = vrot.slane %v520_v47, 1  ;;  %v486_v57 = vadd.f32 %v485_v42, %v484_v51  ;;  %v529_v58 = vrot.slane %v521_v53, 1  ;;  %v530_v59 = vrot.slane %v522_v54, 1 }
  0x1c   :  { %v531_v60 = vrot.slane %v523_v55, 1  ;;  %v954_v62 = vmul.f32 %v843_v8, %v860_v17  ;;  %v958_v63 = vmul.f32 %v848_v9, %v865_v18  ;;  %v963_v0 = vmul.f32 %v67_v15, %v817_v1 }
  0x1d   :  { %v536_v61 = vadd.f32 %v528_v56, %v520_v47  ;;  %487 = vadd.xlane.f32.xlu1 %v486_v57  ;;  %v537_v10 = vadd.f32 %v529_v58, %v521_v53  ;;  %v538_v11 = vadd.f32 %v530_v59, %v522_v54  ;;  %v968_v13 = vmul.f32 %v68_v16, %v822_v2 }
  0x1e   :  { %v539_v12 = vadd.f32 %v531_v60, %v523_v55  ;;  %v973_v19 = vmul.f32 %v69_v21, %v860_v17  ;;  %v978_v15 = vmul.f32 %v70_v25, %v865_v18  ;;  %v83_v20 = vrot.slane %v963_v0, 1 }
  0x1f   :  { %v548_v14 = vmul.f32 %v540_v50, %v536_v61  ;;  %v549_v23 = vmul.f32 %v838_v7, %v537_v10  ;;  %v550_v24 = vmul.f32 %v838_v7, %v538_v11  ;;  %v84_v27 = vrot.slane %v968_v13, 1 }
  0x20   :  { %v551_v16 = vmul.f32 %v838_v7, %v539_v12  ;;  %v85_v29 = vrot.slane %v973_v19, 1  ;;  %v86_v21 = vrot.slane %v978_v15, 1  ;;  %v988_v30 = vmax.f32 %v940_v48, %v83_v20 }
  0x21   :  { %v556_v28 = vrot.slane %v548_v14, 6  ;;  %v557_v25 = vrot.slane %v549_v23, 6  ;;  %v558_v31 = vrot.slane %v550_v24, 6  ;;  %v991_v33 = vmax.f32 %v944_v52, %v84_v27 }
  0x22   :  { %v559_v32 = vrot.slane %v551_v16, 6  ;;  %v995_v7 = vmax.f32 %v954_v62, %v85_v29  ;;  %v998_v35 = vmax.f32 %v958_v63, %v86_v21  ;;  %v95_v36 = vsub.f32 %v940_v48, %v988_v30 }
  0x23   :  { %v564_v34 = vsel %vm199_vm6, %v556_v28, 0.0  ;;  %v565_v37 = vsel %vm199_vm6, %v557_v25, 0.0  ;;  %v567_v38 = vsel %vm199_vm6, %v558_v31, 0.0  ;;  %v96_v6 = vsub.f32 %v944_v52, %v991_v33 }
  0x24   :  { %v569_v39 = vsel %vm199_vm6, %v559_v32, 0.0  ;;  %v566_v40 = vadd.f32 %v565_v37, %v564_v34  ;;  %v97_v41 = vsub.f32 %v954_v62, %v995_v7  ;;  %v98_v42 = vsub.f32 %v958_v63, %v998_v35 }
  0x25   :  { %v99_v43 = vmul.f32 1.442695, %v95_v36  ;;  %v101_v44 = vmul.f32 1.442695, %v96_v6  ;;  %v111_v45 = vrot.slane %v988_v30, 7  ;;  %v112_v46 = vrot.slane %v991_v33, 7 }
  0x26   :  { %v113_v49 = vrot.slane %v995_v7, 7  ;;  %v568_v50 = vadd.f32 %v567_v38, %v566_v40  ;;  %v103_v51 = vmul.f32 1.442695, %v97_v41  ;;  %v105_v47 = vmul.f32 1.442695, %v98_v42 }
  0x27   :  { %732 = vpow2.f32 %v99_v43  ;;  %v114_v53 = vrot.slane %v998_v35, 7  ;;  %v119_v54 = vsub.f32 %v963_v0, %v111_v45  ;;  %v120_v55 = vsub.f32 %v968_v13, %v112_v46 }
  0x28   :  { %v570_v56 = vadd.f32 %v569_v39, %v568_v50  ;;  %734 = vpow2.f32 %v101_v44  ;;  %v121_v57 = vsub.f32 %v973_v19, %v113_v49  ;;  %v626_v58 = vrot.slane %v796_v5, 2 }
  0x29   :  { %736 = vpow2.f32 %v103_v51  ;;  %v122_v59 = vsub.f32 %v978_v15, %v114_v53  ;;  %v123_v60 = vmul.f32 1.442695, %v119_v54  ;;  %v125_v61 = vmul.f32 1.442695, %v120_v55 }
  0x2a   :  { %571 = vadd.xlane.f32.xlu1 %v570_v56  ;;  %738 = vpow2.f32 %v105_v47  ;;  %v127_v10 = vmul.f32 1.442695, %v121_v57  ;;  %v625_v12 = vrot.slane %v879_v26, 2  ;;  %v634_v14 = vsel %vm199_vm6, %v626_v58, 0.0 }
  0x2b   :  { %740 = vpow2.f32 %v123_v60  ;;  %v129_v11 = vmul.f32 1.442695, %v122_v59  ;;  %v216_v24 = vrot.slane %v827_v3, 4  ;;  %v217_v16 = vrot.slane %v832_v4, 4 }
  0x2c   :  { %742 = vpow2.f32 %v125_v61  ;;  %v633_v20 = vsel %vm199_vm6, %v625_v12, 0.0  ;;  %v218_v27 = vrot.slane %v843_v8, 4  ;;  %v219_v29 = vrot.slane %v848_v9, 4 }
  0x2d   :  { %744 = vpow2.f32 %v127_v10  ;;  %v635_v23 = vadd.f32 %v634_v14, %v633_v20  ;;  %v228_v21 = vrot.slane %v827_v3, 3  ;;  %v229_v25 = vrot.slane %v832_v4, 3 }
  0x2e   :  { %746 = vpow2.f32 %v129_v11  ;;  %v230_v31 = vrot.slane %v843_v8, 3  ;;  %v1031_v37 = vmul.f32 %v216_v24, %v817_v1  ;;  %v231_v38 = vrot.slane %v848_v9, 3 }
  0x2f   :  { %v637_v34 = vadd.f32 %v635_v23, %v634_v14  ;;  %v1035_v39 = vmul.f32 %v228_v21, %v817_v1  ;;  %v1038_v6 = vmul.f32 %v229_v25, %v822_v2  ;;  %v1041_v42 = vmul.f32 %v217_v16, %v822_v2 }
  0x30   :  { %v1044_v43 = vmul.f32 %v218_v27, %v860_v17  ;;  %v1047_v44 = vmul.f32 %v230_v31, %v860_v17  ;;  %v1050_v46 = vmul.f32 %v219_v29, %v865_v18  ;;  %v1053_v1 = vmul.f32 %v231_v38, %v865_v18 }
  0x31   :  { %v733_v28 = vpop.eup %732  ;;  %v639_v41 = vadd.f32 %v637_v34, %v634_v14  ;;  %v244_v49 = vrot.slane %v1035_v39, 1  ;;  %v245_v50 = vrot.slane %v1038_v6, 1  ;;  %vm159_vm11 = vcmp.eq.f32.partialorder %v827_v3, 1.0 }
  0x32   :  { %v735_v32 = vpop.eup %734  ;;  %v246_v47 = vrot.slane %v1047_v44, 1  ;;  %v247_v17 = vrot.slane %v1053_v1, 1  ;;  %vm160_vm12 = vcmp.eq.f32.partialorder %v832_v4, 1.0  ;;  %vm161_vm13 = vcmp.eq.f32.partialorder %v843_v8, 1.0 }
  0x33   :  { %v737_v36 = vpop.eup %736  ;;  %640 = vadd.xlane.f32.xlu1 %v639_v41  ;;  %v1061_v55 = vmax.f32 %v1031_v37, %v244_v49  ;;  %v1065_v58 = vmax.f32 %v1041_v42, %v245_v50  ;;  %v168_v38 = vrot.slane %v944_v52, 7  ;;  %vm162_vm14 = vcmp.eq.f32.partialorder %v848_v9, 1.0 }
  0x34   :  { %v739_v40 = vpop.eup %738  ;;  %v1068_v59 = vmax.f32 %v1044_v43, %v246_v47  ;;  %v1072_v10 = vmax.f32 %v1050_v46, %v247_v17  ;;  %v593_v8 = vrot.slane %v879_v26, 1  ;;  %v594_v9 = vrot.slane %v796_v5, 1 }
  0x35   :  { %v741_v45 = vpop.eup %740  ;;  %v256_v11 = vsub.f32 %v1031_v37, %v1061_v55  ;;  %v257_v14 = vsub.f32 %v1041_v42, %v1065_v58  ;;  %v272_v29 = vrot.slane %v1061_v55, 7  ;;  %v273_v25 = vrot.slane %v1065_v58, 7 }
  0x36   :  { %v743_v51 = vpop.eup %742  ;;  %v135_v2 = vrot.slane %v741_v45, 1  ;;  %v258_v20 = vsub.f32 %v1044_v43, %v1068_v59  ;;  %v259_v24 = vsub.f32 %v1050_v46, %v1072_v10  ;;  %v274_v31 = vrot.slane %v1068_v59, 7 }
  0x37   :  { %v745_v53 = vpop.eup %744  ;;  %v136_v54 = vrot.slane %v743_v51, 1  ;;  %v260_v16 = vmul.f32 1.442695, %v256_v11  ;;  %v262_v27 = vmul.f32 1.442695, %v257_v14  ;;  %v275_v34 = vrot.slane %v1072_v10, 7 }
  0x38   :  { %v747_v18 = vpop.eup %746  ;;  %v137_v56 = vrot.slane %v745_v53, 1  ;;  %v143_v57 = vadd.f32 %v733_v28, %v135_v2  ;;  %v264_v28 = vmul.f32 1.442695, %v258_v20  ;;  %v266_v21 = vmul.f32 1.442695, %v259_v24 }
  0x39   :  { %v138_v60 = vrot.slane %v747_v18, 1  ;;  %v144_v61 = vadd.f32 %v735_v32, %v136_v54  ;;  %v167_v32 = vrot.slane %v940_v48, 7  ;;  %v282_v41 = vsub.f32 %v1047_v44, %v274_v31 }
  0x3a   :  { %v145_v12 = vadd.f32 %v737_v36, %v137_v56  ;;  %748 = vlog2.f32 %v143_v57  ;;  %v280_v36 = vsub.f32 %v1035_v39, %v272_v29  ;;  %v169_v45 = vrot.slane %v954_v62, 7 }
  0x3b   :  { %v146_v23 = vadd.f32 %v739_v40, %v138_v60  ;;  %750 = vlog2.f32 %v144_v61  ;;  %v281_v40 = vsub.f32 %v1038_v6, %v273_v25  ;;  %v283_v49 = vsub.f32 %v1053_v1, %v275_v34 }
  0x3c   :  { %752 = vlog2.f32 %v145_v12  ;;  %v284_v50 = vmul.f32 1.442695, %v280_v36  ;;  %v170_v48 = vrot.slane %v958_v63, 7  ;;  %v288_v2 = vmul.f32 1.442695, %v282_v41 }
  0x3d   :  { %754 = vlog2.f32 %v146_v23  ;;  %v286_v51 = vmul.f32 1.442695, %v281_v40  ;;  %v175_v52 = vsel %vm159_vm11, %v963_v0, %v167_v32  ;;  %v290_v47 = vmul.f32 1.442695, %v283_v49 }
  0x3e   :  { %756 = vpow2.f32 %v260_v16  ;;  %v176_v62 = vsel %vm160_vm12, %v968_v13, %v168_v38  ;;  %v177_v63 = vsel %vm161_vm13, %v973_v19, %v169_v45  ;;  %v178_v18 = vsel %vm162_vm14, %v978_v15, %v170_v48 }
  0x3f   :  { %758 = vpow2.f32 %v262_v27  ;;  %v183_v0 = vrot.slane %v175_v52, 1  ;;  %v184_v60 = vrot.slane %v176_v62, 1  ;;  %v185_v12 = vrot.slane %v177_v63, 1 }
  0x40   :  { %760 = vpow2.f32 %v264_v28  ;;  %v186_v23 = vrot.slane %v178_v18, 1  ;;  %v320_v18 = vrot.slane %v1035_v39, 3 }
  0x41   :  { %762 = vpow2.f32 %v266_v21 }
  0x42   :  { %764 = vpow2.f32 %v284_v50 }
  0x43   :  { %766 = vpow2.f32 %v286_v51 }
  0x44   :  { %v749_v53 = vpop.eup %748  ;;  %768 = vpow2.f32 %v288_v2 }
  0x45   :  { %v751_v54 = vpop.eup %750  ;;  %v148_v17 = vmul.f32 0.6931472, %v749_v53  ;;  %770 = vpow2.f32 %v290_v47 }
  0x46   :  { %v753_v56 = vpop.eup %752  ;;  %v150_v57 = vmul.f32 0.6931472, %v751_v54 }
  0x47   :  { %v755_v61 = vpop.eup %754  ;;  %v152_v13 = vmul.f32 0.6931472, %v753_v56  ;;  %v155_v11 = vadd.f32 %v148_v17, %v988_v30  ;;  %v321_v56 = vrot.slane %v1038_v6, 3 }
  0x48   :  { %v757_v14 = vpop.eup %756  ;;  %v154_v20 = vmul.f32 0.6931472, %v755_v61  ;;  %v156_v19 = vadd.f32 %v150_v57, %v991_v33  ;;  %v333_v57 = vrot.slane %v1041_v42, 2  ;;  %v323_v61 = vrot.slane %v1053_v1, 3 }
  0x49   :  { %v759_v24 = vpop.eup %758  ;;  %v157_v16 = vadd.f32 %v152_v13, %v995_v7  ;;  %v191_v27 = vsub.f32 %v155_v11, %v183_v0  ;;  %v332_v0 = vrot.slane %v1031_v37, 2  ;;  %v334_v13 = vrot.slane %v1044_v43, 2 }
  0x4a   :  { %v761_v15 = vpop.eup %760  ;;  %v158_v28 = vadd.f32 %v154_v20, %v998_v35  ;;  %v192_v29 = vsub.f32 %v156_v19, %v184_v60  ;;  %v322_v60 = vrot.slane %v1047_v44, 3  ;;  %v335_v11 = vrot.slane %v1050_v46, 2 }
  0x4b   :  { %v763_v21 = vpop.eup %762  ;;  %v193_v25 = vsub.f32 %v157_v16, %v185_v12  ;;  %v195_v31 = vmul.f32 %v871_v22, %v191_v27  ;;  %v340_v12 = vsel %vm159_vm11, %v320_v18, %v332_v0  ;;  %v341_v39 = vsel %vm160_vm12, %v321_v56, %v333_v57 }
  0x4c   :  { %v765_v32 = vpop.eup %764  ;;  %v194_v30 = vsub.f32 %v158_v28, %v186_v23  ;;  %v196_v34 = vmul.f32 0.0, %v192_v29  ;;  %v342_v37 = vsel %vm161_vm13, %v322_v60, %v334_v13  ;;  %v343_v6 = vsel %vm162_vm14, %v323_v61, %v335_v11 }
  0x4d   :  { %v767_v36 = vpop.eup %766  ;;  %v197_v38 = vmul.f32 0.0, %v193_v25  ;;  %v200_v33 = vsel %vm199_vm6, %v195_v31, 0.0  ;;  %v296_v40 = vrot.slane %v765_v32, 1  ;;  %v348_v1 = vrot.slane %v340_v12, 6 }
  0x4e   :  { %v769_v41 = vpop.eup %768  ;;  %v198_v45 = vmul.f32 0.0, %v194_v30  ;;  %v201_v7 = vsel %vm199_vm6, %v196_v34, 0.0  ;;  %v297_v49 = vrot.slane %v767_v36, 1  ;;  %v349_v19 = vrot.slane %v341_v39, 6 }
  0x4f   :  { %v771_v50 = vpop.eup %770  ;;  %v202_v35 = vadd.f32 %v201_v7, %v200_v33  ;;  %v203_v48 = vsel %vm199_vm6, %v197_v38, 0.0  ;;  %v298_v51 = vrot.slane %v769_v41, 1  ;;  %v304_v2 = vadd.f32 %v757_v14, %v296_v40 }
  0x50   :  { %v205_v52 = vsel %vm199_vm6, %v198_v45, 0.0  ;;  %v299_v47 = vrot.slane %v771_v50, 1  ;;  %v305_v62 = vadd.f32 %v759_v24, %v297_v49  ;;  %v350_v24 = vrot.slane %v342_v37, 6 }
  0x51   :  { %v204_v53 = vadd.f32 %v203_v48, %v202_v35  ;;  %v306_v63 = vadd.f32 %v761_v15, %v298_v51  ;;  %772 = vlog2.f32 %v304_v2  ;;  %v351_v4 = vrot.slane %v343_v6, 6 }
  0x52   :  { %v307_v54 = vadd.f32 %v763_v21, %v299_v47  ;;  %774 = vlog2.f32 %v305_v62  ;;  %v601_v30 = vsel %vm199_vm6, %v593_v8, 0.0  ;;  %v602_v34 = vsel %vm199_vm6, %v594_v9, 0.0 }
  0x53   :  { %v206_v17 = vadd.f32 %v205_v52, %v204_v53  ;;  %776 = vlog2.f32 %v306_v63  ;;  %v603_v33 = vadd.f32 %v602_v34, %v601_v30 }
  0x54   :  { %778 = vlog2.f32 %v307_v54 }
  0x55   :  { %207 = vadd.xlane.f32.xlu0 %v206_v17  ;;  %v605_v49 = vadd.f32 %v603_v33, %v602_v34 }
  0x57   :  { %v607_v35 = vadd.f32 %v605_v49, %v602_v34 }
  0x5b   :  { %v773_v14 = vpop.eup %772 }
  0x5c   :  { %v775_v42 = vpop.eup %774  ;;  %v309_v44 = vmul.f32 0.6931472, %v773_v14 }
  0x5d   :  { %v777_v20 = vpop.eup %776  ;;  %v311_v43 = vmul.f32 0.6931472, %v775_v42 }
  0x5e   :  { %v779_v46 = vpop.eup %778  ;;  %v313_v23 = vmul.f32 0.6931472, %v777_v20  ;;  %v316_v3 = vadd.f32 %v309_v44, %v1061_v55 }
  0x5f   :  { %v315_v16 = vmul.f32 0.6931472, %v779_v46  ;;  %v317_v27 = vadd.f32 %v311_v43, %v1065_v58 }
  0x60   :  { %v318_v15 = vadd.f32 %v313_v23, %v1068_v59  ;;  %v356_v28 = vsub.f32 %v316_v3, %v348_v1 }
  0x61   :  { %v319_v29 = vadd.f32 %v315_v16, %v1072_v10  ;;  %v357_v21 = vsub.f32 %v317_v27, %v349_v19 }
  0x62   :  { %v358_v25 = vsub.f32 %v318_v15, %v350_v24  ;;  %v360_v31 = vmul.f32 %v871_v22, %v356_v28 }
  0x63   :  { %v359_v32 = vsub.f32 %v319_v29, %v351_v4  ;;  %v361_v55 = vmul.f32 0.0, %v357_v21 }
  0x64   :  { %v362_v58 = vmul.f32 0.0, %v358_v25  ;;  %v368_v36 = vrot.slane %v360_v31, 4 }
  0x65   :  { %v363_v26 = vmul.f32 0.0, %v359_v32  ;;  %v369_v38 = vrot.slane %v361_v55, 4 }
  0x66   :  { %v370_v5 = vrot.slane %v362_v58, 4  ;;  %v376_v59 = vsel %vm199_vm6, %v368_v36, 0.0 }
  0x67   :  { %v371_v40 = vrot.slane %v363_v26, 4  ;;  %v377_v10 = vsel %vm199_vm6, %v369_v38, 0.0 }
  0x68   :  { %v378_v41 = vadd.f32 %v377_v10, %v376_v59  ;;  %v379_v22 = vsel %vm199_vm6, %v370_v5, 0.0 }
  0x69   :  { %v381_v45 = vsel %vm199_vm6, %v371_v40, 0.0 }
  0x6a   :  { %v380_v7 = vadd.f32 %v379_v22, %v378_v41 }
  0x6c   :  { %v382_v50 = vadd.f32 %v381_v45, %v380_v7 }
  0x6e   :  { %383 = vadd.xlane.f32.xlu0 %v382_v50 }
  0x72   :  { %608 = vadd.xlane.f32.xlu0 %v607_v35 }
  0xaa   :  { %v488_v47 = vpop.xlane.xlu1 %487 }
  0xab   :  { %v489_v17 = vrot.slane %v488_v47, 4 }
  0xad   :  { %v490_v56 = vadd.f32 %v489_v17, %v488_v47 }
  0xaf   :  { %v491_v61 = vrot.slane %v490_v56, 2 }
  0xb1   :  { %v492_v42 = vadd.f32 %v491_v61, %v490_v56 }
  0xb3   :  { %v493_v23 = vrot.slane %v492_v42, 1 }
  0xb5   :  { %v494_v8 = vadd.f32 %v493_v23, %v492_v42 }
  0xb7   :  { %v572_v54 = vpop.xlane.xlu1 %571 }
  0xb8   :  { %v573_v18 = vrot.slane %v572_v54, 4 }
  0xba   :  { %v574_v60 = vadd.f32 %v573_v18, %v572_v54 }
  0xbc   :  { %v575_v12 = vrot.slane %v574_v60, 2 }
  0xbe   :  { %v576_v20 = vadd.f32 %v575_v12, %v574_v60 }
  0xc0   :  { %v641_v0 = vpop.xlane.xlu1 %640  ;;  %v577_v4 = vrot.slane %v576_v20, 1 }
  0xc1   :  { %v642_v57 = vrot.slane %v641_v0, 4 }
  0xc2   :  { %v578_v15 = vadd.f32 %v577_v4, %v576_v20 }
  0xc3   :  { %v643_v13 = vadd.f32 %v642_v57, %v641_v0 }
  0xc5   :  { %v644_v37 = vrot.slane %v643_v13, 2 }
  0xc7   :  { %v645_v46 = vadd.f32 %v644_v37, %v643_v13 }
  0xc9   :  { %v646_v9 = vrot.slane %v645_v46, 1 }
  0xcb   :  { %v647_v21 = vadd.f32 %v646_v9, %v645_v46 }
  0xe2   :  { %v208_v48 = vpop.xlane.xlu0 %207 }
  0xe3   :  { %v209_v51 = vrot.slane %v208_v48, 4 }
  0xe5   :  { %v210_v2 = vadd.f32 %v209_v51, %v208_v48 }
  0xe7   :  { %v211_v52 = vrot.slane %v210_v2, 2 }
  0xe9   :  { %v212_v62 = vadd.f32 %v211_v52, %v210_v2 }
  0xeb   :  { %v213_v53 = vrot.slane %v212_v62, 1 }
  0xed   :  { %v214_v63 = vadd.f32 %v213_v53, %v212_v62 }
  0xef   :  { %713 = vpush %v214_v63 }
  0xfb   :  { %v384_v11 = vpop.xlane.xlu0 %383 }
  0xfc   :  { %v385_v39 = vrot.slane %v384_v11, 4 }
  0xfe   :  { %v386_v14 = vadd.f32 %v385_v39, %v384_v11 }
  0xff   :  { %v609_v6 = vpop.xlane.xlu0 %608 }
 0x100   :  { %v387_v44 = vrot.slane %v386_v14, 2  ;;  %v610_v1 = vrot.slane %v609_v6, 4 }
 0x102   :  { %v611_v43 = vadd.f32 %v610_v1, %v609_v6  ;;  %v388_v19 = vadd.f32 %v387_v44, %v386_v14 }
 0x104   :  { %v612_v3 = vrot.slane %v611_v43, 2  ;;  %v389_v24 = vrot.slane %v388_v19, 1 }
 0x106   :  { %v613_v16 = vadd.f32 %v612_v3, %v611_v43  ;;  %v390_v27 = vadd.f32 %v389_v24, %v388_v19 }
 0x108   :  { %715 = vpush %v390_v27  ;;  %v614_v28 = vrot.slane %v613_v16, 1 }
 0x109   :  { %717 = vpush %v494_v8 }
 0x10a   :  { %719 = vpush %v578_v15  ;;  %v615_v29 = vadd.f32 %v614_v28, %v613_v16 }
 0x10c   :  { %721 = vpush %v615_v29 }
 0x10d   :  { %723 = vpush %v647_v21 }
 0x120   :  { %s714_s0 = spop %713 }
 0x139   :  { %s716_s24 = spop %715 }
 0x13a   :  { %s657_s25 = sadd.f32 %s716_s24, %s714_s0  ;;  %s718_s26 = spop %717 }
 0x13b   :  { %s720_s27 = spop %719 }
 0x13c   :  { %s658_s7 = smul.f32 0.0625, %s657_s25 }
 0x13d   :  { %s722_s28 = spop %721 }
 0x13e   :  { %s663_s30 = smax.f32 %s797_s29, %s722_s28  ;;  %s724_s3 = spop %723 }
 0x13f   :  { %v664_v25 = vstv %s663_s30  ;;  %s671_s4 = smax.f32 %s797_s29, %s724_s3  ;;  %p661_p0 = scmp.gt.f32.partialorder %s722_s28, 0.0 }
 0x140   :  { %780 = vrcp.f32 %v664_v25  ;;  %v672_v31 = vstv %s671_s4  ;;  %p669_p1 = scmp.gt.f32.partialorder %s724_s3, 0.0 }
 0x141   :  { %782 = vrcp.f32 %v672_v31 }
 0x14a   :  { %v781_v32 = vpop.eup %780 }
 0x14b   :  { %725 = vpush %v781_v32  ;;  %v783_v55 = vpop.eup %782 }
 0x14c   :  { %727 = vpush %v783_v55 }
 0x17c   :  { %s726_s5 = spop %725 }
 0x17d   :  { %s667_s6 = smul.f32 %s726_s5, %s718_s26  ;;  %s728_s8 = spop %727 }
 0x17e   :  { %s675_s9 = smul.f32 %s728_s8, %s720_s27 }
 0x17f   :  { %s1175_s6 = smov (!%p661_p0, %s667_s6), 0.0 }
 0x180   :  { %s677_s10 = sadd.f32 %s1175_s6, %s658_s7  ;;  %s1177_s9 = smov (!%p669_p1, %s675_s9), 0.0 }
 0x182   :  { %s678_s11 = sadd.f32 %s677_s10, %s1177_s9 }
 0x184   :  { %680 = sst [smem:[#allocation3]] %s678_s11 }
 0x185   :  { %793 = shalt.err (!%p790_p4)
}
 0x186   :  { %s798_s19 = smov [#allocation3]  }
 0x187   :  { %688 = dma.smem_to_hbm %s798_s19, 16, %s1159_s2, [#allocation4]  }
 0x188   :  { %794 = dma.done.wait [#allocation4], 16  }
 0x189   :  { %795 = vsyncadd [#allocation4], 4294967280 }
 0x18a   :  { %692 = sfence }
 0x18b   :  { %693 = vsyncpa [#allocation4], 1 }

</bundles_post_ra>
